<compile_context>
chip_gen: v6e
topology: v6e:2x2x1
jax: 0.10.0
libtpu: 0.0.40
codegen_flags: <defaults>
</compile_context>

<pallas_src>
import math

import jax
import jax.numpy as jnp
from jax import lax
from jax.experimental import pallas as pl
from jax.experimental.pallas import tpu as pltpu


def rope_kernel(x_ref, cos_ref, sin_ref, o_ref):
    """Blocks are (seq_tile, d_k), RoPE pairs interleaved along the lane dim.

    cos_ref holds cos duplicated into both lanes of each pair; sin_ref holds
    the sign pattern [-sin, +sin, ...] baked in, so:
        out = x * cos + swap_pairs(x) * sin
    reproduces
        out[2c]   = x[2c]*cos[c] - x[2c+1]*sin[c]
        out[2c+1] = x[2c]*sin[c] + x[2c+1]*cos[c]
    """
    x = x_ref[...].astype(jnp.float32)
    cos = cos_ref[...].astype(jnp.float32)
    sin = sin_ref[...].astype(jnp.float32)
    d = x.shape[-1]
    # Pair swap (lane 2c <-> lane 2c+1) via two XLU lane rotations + a
    # lane-parity select. pltpu.roll follows jnp.roll semantics:
    #   roll(x, 1)[i]     == x[i-1]   (wanted at odd lanes)
    #   roll(x, d-1)[i]   == x[i+1]   (wanted at even lanes)
    # Wrap-around lanes are never selected (lane 0 is even, lane d-1 is odd).
    fwd = pltpu.roll(x, 1, 1)
    bwd = pltpu.roll(x, d - 1, 1)
    lane = lax.broadcasted_iota(jnp.int32, x.shape, 1)
    swapped = jnp.where(lane % 2 == 1, fwd, bwd)
    o_ref[...] = (x * cos + swapped * sin).astype(o_ref.dtype)


def make_rope_tables(d_k, theta, max_seq_len, dtype=jnp.float32):
    """Precompute interleaved full-width cos/sin buffers (register_buffer analogue)."""
    half = d_k // 2
    k = jnp.arange(half, dtype=jnp.float32)
    pos = jnp.arange(max_seq_len, dtype=jnp.float32)
    theta_k = jnp.asarray(theta, jnp.float32) ** (-2.0 * k / d_k)
    angles = pos[:, None] * theta_k[None, :]                  # (max_seq_len, half)
    cos_h = jnp.cos(angles)
    sin_h = jnp.sin(angles)
    # Interleave: cos_full[:, 2c] = cos_full[:, 2c+1] = cos_h[:, c]
    cos_full = jnp.repeat(cos_h, 2, axis=-1)
    # sin_full[:, 2c] = -sin_h[:, c] ; sin_full[:, 2c+1] = +sin_h[:, c]
    sin_full = jnp.stack([-sin_h, sin_h], axis=-1).reshape(max_seq_len, d_k)
    return cos_full.astype(dtype), sin_full.astype(dtype)


def _pick_seq_tile(seq_len, d_k, itemsize, target_bytes=1 << 20):
    """Largest seq tile with ~target_bytes per (ts, d_k) block (no whole-seq fallback)."""
    max_rows = max(8, target_bytes // max(1, d_k * itemsize))
    if seq_len <= max_rows:
        return seq_len                      # full-extent block is always legal
    return (max_rows // 8) * 8              # multiple of 8; grid uses cdiv


def rope_pallas(x, cos_full, sin_full, pos_ids=None):
    """Apply RoPE. x: (..., seq, d_k); cos_full/sin_full: (max_seq_len, d_k)."""
    *lead, seq, d_k = x.shape
    assert d_k % 2 == 0
    max_seq_len = cos_full.shape[0]
    assert cos_full.shape == (max_seq_len, d_k)
    assert seq <= max_seq_len

    batch = math.prod(lead) if lead else 1
    x3 = x.reshape(batch, seq, d_k)          # contiguous reshape, no data movement

    # Tables travel in bf16 when activations are bf16 (halves table DMA);
    # rotation math stays f32 inside the kernel.
    tbl_dtype = jnp.bfloat16 if x.dtype == jnp.bfloat16 else cos_full.dtype

    if pos_ids is None:
        cos = cos_full[:seq].astype(tbl_dtype)
        sin = sin_full[:seq].astype(tbl_dtype)
        batched_tables = False
    elif pos_ids.ndim == 1:
        assert pos_ids.shape[0] == seq
        cos = jnp.take(cos_full, pos_ids, axis=0).astype(tbl_dtype)
        sin = jnp.take(sin_full, pos_ids, axis=0).astype(tbl_dtype)
        batched_tables = False
    else:
        assert pos_ids.ndim == 2
        assert len(lead) == 1 and pos_ids.shape == (batch, seq), (
            "2-D pos_ids requires x of shape (batch, seq, d_k)")
        # TODO(synk): gather rows in-kernel from a VMEM-resident table (SMEM
        # pos_ids block) instead of materializing (batch, seq, d_k) tables.
        flat = pos_ids.reshape(-1)
        cos = jnp.take(cos_full, flat, axis=0).reshape(batch, seq, d_k).astype(tbl_dtype)
        sin = jnp.take(sin_full, flat, axis=0).reshape(batch, seq, d_k).astype(tbl_dtype)
        batched_tables = True

    ts = _pick_seq_tile(seq, d_k, jnp.dtype(x.dtype).itemsize)
    num_seq_tiles = pl.cdiv(seq, ts)
    # seq tiles outer (megacore "parallel"), batch inner ("arbitrary") so the
    # shared table block is revisited across the inner axis (no re-DMA).
    grid = (num_seq_tiles, batch)

    tok_spec = pl.BlockSpec((None, ts, d_k), lambda s, b: (b, s, 0))
    if batched_tables:
        tbl_spec = pl.BlockSpec((None, ts, d_k), lambda s, b: (b, s, 0))
    else:
        tbl_spec = pl.BlockSpec((ts, d_k), lambda s, b: (s, 0))

    act_bytes = x3.size * jnp.dtype(x3.dtype).itemsize
    tbl_bytes = 2 * cos.size * jnp.dtype(cos.dtype).itemsize

    out3 = pl.pallas_call(
        rope_kernel,
        out_shape=jax.ShapeDtypeStruct((batch, seq, d_k), x.dtype),
        grid=grid,
        in_specs=[tok_spec, tbl_spec, tbl_spec],
        out_specs=tok_spec,
        compiler_params=pltpu.CompilerParams(
            dimension_semantics=("parallel", "arbitrary"),
            vmem_limit_bytes=32 * 1024 * 1024,
        ),
        cost_estimate=pl.CostEstimate(
            flops=6 * x3.size,
            transcendentals=0,
            bytes_accessed=2 * act_bytes + tbl_bytes,
        ),
    )(x3, cos, sin)

    return out3.reshape(x.shape)


def rope_reference(x, d_k, theta, max_seq_len, pos_ids=None):
    """Independent pure-JAX port of the PyTorch forward, for validation."""
    half = d_k // 2
    k = jnp.arange(half, dtype=jnp.float32)
    pos = jnp.arange(max_seq_len, dtype=jnp.float32)
    theta_k = jnp.asarray(theta, jnp.float32) ** (-2.0 * k / d_k)
    angles = pos[:, None] * theta_k[None, :]
    cos_h, sin_h = jnp.cos(angles), jnp.sin(angles)
    seq = x.shape[-2]
    if pos_ids is None:
        cos, sin = cos_h[:seq], sin_h[:seq]
    else:
        cos, sin = cos_h[pos_ids], sin_h[pos_ids]
    x1 = x[..., 0::2]
    x2 = x[..., 1::2]
    r1 = x1 * cos - x2 * sin
    r2 = x1 * sin + x2 * cos
    return jnp.stack([r1, r2], axis=-1).reshape(x.shape)


if __name__ == "__main__":
    d_k = 128
    theta = 10000.0
    max_seq_len = 32
    batch, heads, seq = 2, 2, 16

    key = jax.random.PRNGKey(0)
    kx, k1, k2 = jax.random.split(key, 3)

    cos_full, sin_full = make_rope_tables(d_k, theta, max_seq_len)

    # Default path (pos_ids=None), 4-D activations (batch, heads, seq, d_k).
    x4 = jax.random.normal(kx, (batch, heads, seq, d_k), dtype=jnp.float32)
    out = jax.block_until_ready(rope_pallas(x4, cos_full, sin_full))
    ref = rope_reference(x4, d_k, theta, max_seq_len)
    assert out.shape == x4.shape
    assert jnp.allclose(out, ref, atol=1e-5, rtol=1e-5)

    # 1-D pos_ids gather path.
    pos1 = jax.random.randint(k1, (seq,), 0, max_seq_len, dtype=jnp.int32)
    out1 = jax.block_until_ready(rope_pallas(x4, cos_full, sin_full, pos_ids=pos1))
    ref1 = rope_reference(x4, d_k, theta, max_seq_len, pos_ids=pos1)
    assert jnp.allclose(out1, ref1, atol=1e-5, rtol=1e-5)

    # 2-D pos_ids gather path (x must be (batch, seq, d_k)).
    x3 = jax.random.normal(kx, (batch, seq, d_k), dtype=jnp.float32)
    pos2 = jax.random.randint(k2, (batch, seq), 0, max_seq_len, dtype=jnp.int32)
    out2 = jax.block_until_ready(rope_pallas(x3, cos_full, sin_full, pos_ids=pos2))
    ref2 = rope_reference(x3, d_k, theta, max_seq_len, pos_ids=pos2)
    assert jnp.allclose(out2, ref2, atol=1e-5, rtol=1e-5)

    print("KERNEL_OK")
</pallas_src>

<mosaic_0001>
module attributes {stable_mosaic.version = 11 : i64} {
  func.func @rope_kernel(%arg0: i32, %arg1: i32, %arg2: memref<1x16x128xf32, #tpu.memory_space<vmem>>, %arg3: memref<16x128xf32, #tpu.memory_space<vmem>>, %arg4: memref<16x128xf32, #tpu.memory_space<vmem>>, %arg5: memref<1x16x128xf32, #tpu.memory_space<vmem>>) attributes {dimension_semantics = [#tpu.dimension_semantics<parallel>, #tpu.dimension_semantics<arbitrary>], iteration_bounds = array<i64: 1, 4>, scalar_prefetch = 0 : i64, scratch_operands = 0 : i64, tpu.core_type = #tpu.core_type<tc>, window_params = [{transform_indices = @transform_0, window_bounds = array<i64: 1, 16, 128>}, {transform_indices = @transform_1, window_bounds = array<i64: 16, 128>}, {transform_indices = @transform_2, window_bounds = array<i64: 16, 128>}, {transform_indices = @transform_3, window_bounds = array<i64: 1, 16, 128>}]} {
    %c0 = arith.constant 0 : index
    %c0_0 = arith.constant 0 : index
    %c0_1 = arith.constant 0 : index
    %0 = vector.load %arg2[%c0, %c0_0, %c0_1] : memref<1x16x128xf32, #tpu.memory_space<vmem>>, vector<1x16x128xf32>
    %1 = vector.shape_cast %0 : vector<1x16x128xf32> to vector<16x128xf32>
    %c0_2 = arith.constant 0 : index
    %c0_3 = arith.constant 0 : index
    %2 = vector.load %arg3[%c0_2, %c0_3] : memref<16x128xf32, #tpu.memory_space<vmem>>, vector<16x128xf32>
    %c0_4 = arith.constant 0 : index
    %c0_5 = arith.constant 0 : index
    %3 = vector.load %arg4[%c0_4, %c0_5] : memref<16x128xf32, #tpu.memory_space<vmem>>, vector<16x128xf32>
    %c1_i32 = arith.constant 1 : i32
    %4 = tpu.dynamic_rotate %1 by %c1_i32 dim 1 : vector<16x128xf32>, i32 -> vector<16x128xf32>
    %c127_i32 = arith.constant 127 : i32
    %5 = tpu.dynamic_rotate %1 by %c127_i32 dim 1 : vector<16x128xf32>, i32 -> vector<16x128xf32>
    %6 = tpu.iota {dimensions = array<i32: 1>} : vector<16x128xi32>
    %c2_i32 = arith.constant 2 : i32
    %c0_i32 = arith.constant 0 : i32
    %7 = arith.cmpi eq, %c2_i32, %c0_i32 : i32
    %c1_i32_6 = arith.constant 1 : i32
    %8 = arith.select %7, %c1_i32_6, %c2_i32 : i32
    %9 = vector.broadcast %8 : i32 to vector<16x128xi32>
    %10 = arith.remsi %6, %9 : vector<16x128xi32>
    %c0_i32_7 = arith.constant 0 : i32
    %11 = vector.broadcast %c0_i32_7 : i32 to vector<16x128xi32>
    %12 = arith.cmpi ne, %10, %11 : vector<16x128xi32>
    %c0_i32_8 = arith.constant 0 : i32
    %13 = vector.broadcast %c0_i32_8 : i32 to vector<16x128xi32>
    %14 = arith.cmpi slt, %10, %13 : vector<16x128xi32>
    %c0_i32_9 = arith.constant 0 : i32
    %15 = arith.cmpi slt, %8, %c0_i32_9 : i32
    %16 = vector.broadcast %15 : i1 to vector<16x128xi1>
    %17 = vector.broadcast %16 : vector<16x128xi1> to vector<16x128xi1>
    %18 = arith.xori %14, %17 : vector<16x128xi1>
    %19 = arith.andi %18, %12 : vector<16x128xi1>
    %20 = vector.broadcast %8 : i32 to vector<16x128xi32>
    %21 = arith.addi %10, %20 : vector<16x128xi32>
    %22 = arith.select %19, %21, %10 : vector<16x128xi1>, vector<16x128xi32>
    %c1_i32_10 = arith.constant 1 : i32
    %23 = vector.broadcast %c1_i32_10 : i32 to vector<16x128xi32>
    %24 = arith.cmpi eq, %22, %23 : vector<16x128xi32>
    %25 = arith.select %24, %4, %5 : vector<16x128xi1>, vector<16x128xf32>
    %26 = arith.mulf %1, %2 : vector<16x128xf32>
    %27 = arith.mulf %25, %3 : vector<16x128xf32>
    %28 = arith.addf %26, %27 : vector<16x128xf32>
    %c0_11 = arith.constant 0 : index
    %c0_12 = arith.constant 0 : index
    %c0_13 = arith.constant 0 : index
    %29 = vector.load %arg5[%c0_11, %c0_12, %c0_13] : memref<1x16x128xf32, #tpu.memory_space<vmem>>, vector<1x16x128xf32>
    %30 = vector.shape_cast %29 : vector<1x16x128xf32> to vector<16x128xf32>
    %31 = vector.shape_cast %28 : vector<16x128xf32> to vector<1x16x128xf32>
    tpu.vector_store %arg5[%c0_11, %c0_12, %c0_13], %31 {strides = array<i32>} : memref<1x16x128xf32, #tpu.memory_space<vmem>>, vector<1x16x128xf32>,
    return
  }
  func.func @transform_0(%arg0: i32, %arg1: i32) -> (i32, i32, i32) {
    %c0_i32 = arith.constant 0 : i32
    %c0_i32_0 = arith.constant 0 : i32
    return %arg1, %arg0, %c0_i32 : i32, i32, i32
  }
  func.func @transform_1(%arg0: i32, %arg1: i32) -> (i32, i32) {
    %c0_i32 = arith.constant 0 : i32
    %c0_i32_0 = arith.constant 0 : i32
    return %arg0, %c0_i32 : i32, i32
  }
  func.func @transform_2(%arg0: i32, %arg1: i32) -> (i32, i32) {
    %c0_i32 = arith.constant 0 : i32
    %c0_i32_0 = arith.constant 0 : i32
    return %arg0, %c0_i32 : i32, i32
  }
  func.func @transform_3(%arg0: i32, %arg1: i32) -> (i32, i32, i32) {
    %c0_i32 = arith.constant 0 : i32
    %c0_i32_0 = arith.constant 0 : i32
    return %arg1, %arg0, %c0_i32 : i32, i32, i32
  }
}

</mosaic_0001>

<bundles_post_ra>
// kernel: tpu_custom_call.1
= control target key start
LH: loop header
LB: loop body
LE: loop exit
PB: predicated region body
PF: predicated region fallthrough
CT: control target
= control target key end

     0   :  { %8 = vsyncpa [#allocation3], 0  ;;  %s930_s0 = inlined_call_operand.hbm [shape: f32[4,16,128], index: 0, kind: input, shape index: {}]   ;;  %s931_s1 = inlined_call_operand.hbm [shape: f32[16,128], index: 1, kind: input, shape index: {}]   ;;  %s932_s2 = inlined_call_operand.hbm [shape: f32[16,128], index: 2, kind: input, shape index: {}]   ;;  %s933_s3 = inlined_call_operand.hbm [shape: f32[4,16,128], index: 3, kind: output, shape index: {}]  }
   0x1   :  { %10 = vsyncpa [#allocation3 + $0x1], 0 }
   0x2   :  { %11 = vsyncpa [#allocation6], 0 }
   0x3   :  { %12 = vsyncpa [#allocation4], 0 }
   0x4   :  { %14 = vsyncpa [#allocation4 + $0x1], 0  ;;  %s727_s12 = smov 0   ;;  %s729_s13 = smov 0  }
   0x5   :  { %s731_s14 = smov 0   ;;  %s733_s15 = smov 0  }
   0x6   :  { %s735_s16 = smov 0   ;;  %s737_s17 = smov 0  }
   0x7 LB: > { %s421_s18 = sadd.s32 4294967295, %s695_s17   ;;  %s422_s19 = sadd.s32 4294967294, %s695_s17   ;;  %s695_s17 = sphi %s737_s17, %s20_s17   ;;  %s691_s16 = sphi %s735_s16, %s951_s16   ;;  %s687_s15 = sphi %s733_s15, %s950_s15   ;;  %s683_s14 = sphi %s731_s14, %s949_s14   ;;  %s679_s13 = sphi %s729_s13, %s948_s13   ;;  %s675_s12 = sphi %s727_s12, %s947_s12  }
   0x8   : > { %p54_p0 = scmp.ne.s32.totalorder %s679_s13, %s675_s12  ;;  %p761_p1 = scmp.eq.s32.totalorder %s421_s18, 0 }
   0x9   : > { %p765_p2 = scmp.eq.s32.totalorder %s421_s18, 3  ;;  %p138_p3 = scmp.eq.s32.totalorder %s422_s19, 3 }
   0xa   : > { %p771_p4 = por %p761_p1, %p54_p0  ;;  %p423_p5 = scmp.ge.s32.totalorder %s695_s17, 1 }
   0xb   : > { %p776_p6 = por %p138_p3, %p54_p0  ;;  %p145_p7 = scmp.lt.s32.totalorder %s695_s17, 5 }
   0xc   : > { %s697_s25 = smov [#allocation5]   ;;  %s698_s28 = smov [#allocation7]  }
   0xd   : > { %s938_s23 = scalar_select %p776_p6, 1, 0 }
   0xe   : > { %p781_p8 = pnand %p423_p5, %p145_p7  ;;  %s160_s26 = sshll.u32 %s697_s25, 4  ;;  %s161_s26 = int_to_ptr.vmem [resolvable:$true] %s160_s26 }
   0xf   : > { %s176_s29 = sshll.u32 %s698_s28, 4  ;;  %s542_s30 = scalar_lea.vmem %s161_s26, 256  ;;  %s177_s29 = int_to_ptr.vmem [resolvable:$true] %s176_s29 }
  0x10   : > { %p454_p9 = pneg %p781_p8  ;;  %p543_p12 = scmp.ne.s32.totalorder %s161_s26, %s542_s30 }
  0x11   : > { %p550_p3 = scmp.lt.s32.totalorder %s161_s26, %s161_s26  ;;  %p551_p5 = scmp.lt.s32.totalorder %s542_s30, %s542_s30 }
  0x12   : > { %p789_p10 = pnand %p454_p9, %p761_p1 }
  0x13   : > { %p552_p7 = por %p551_p5, %p550_p3 }
  0x14   : > { %p533_p11 = pneg %p789_p10 }
  0x16   : > { %p545_p13 = pnand %p543_p12, %p533_p11 }
  0x18   : > { %p546_p0 = pneg %p545_p13 }
  0x1a   : > { %p553_p9 = pnand %p552_p7, %p546_p0 }
  0x1c   : > { %556 = shalt.err (!%p553_p9)
}
  0x1d   : > { %s934_s4 = smov 128   ;;  %s700_s5 = smov 8  }
  0x1e   : > { %457 = dma.hbm_to_vmem [thread:$0]  (!%p789_p10), %s931_s1, 256, %s161_s26, [#allocation6], %s934_s4, %s934_s4, %s700_s5  }
  0x1f   : > { %s568_s8 = scalar_lea.vmem %s177_s29, 256  ;;  %p576_p0 = scmp.lt.s32.totalorder %s177_s29, %s177_s29 }
  0x20   : > { %p569_p12 = scmp.ne.s32.totalorder %s177_s29, %s568_s8  ;;  %p577_p5 = scmp.lt.s32.totalorder %s568_s8, %s568_s8 }
  0x22   : > { %p571_p13 = pnand %p569_p12, %p533_p11  ;;  %p578_p7 = por %p577_p5, %p576_p0 }
  0x24   : > { %p572_p3 = pneg %p571_p13 }
  0x26   : > { %p579_p9 = pnand %p578_p7, %p572_p3 }
  0x28   : > { %582 = shalt.err (!%p579_p9)
}
  0x29   : > { %460 = dma.hbm_to_vmem [thread:$0]  (!%p789_p10), %s932_s2, 256, %s177_s29, [#allocation6], %s934_s4, %s934_s4, %s700_s5  }
  0x2a   : > { %s29_s11 = sadd.s32 1, %s691_s16  ;;  %s41_s18 = sadd.s32 1, %s683_s14 }
  0x2b   : > { %p30_p11 = scmp.ge.s32.totalorder %s29_s11, 4  ;;  %p48_p12 = scmp.ne.s32.totalorder %s683_s14, %s679_s13 }
  0x2c   : > { %p49_p13 = scmp.eq.s32.totalorder %s695_s17, 0  ;;  %p471_p3 = scmp.lt.s32.totalorder %s695_s17, 4 }
  0x2d   : > { %s953_s11 = smov (%p30_p11, %s29_s11), 0  ;;  %p827_p5 = por %p765_p2, %p48_p12 }
  0x2e   : > { %p50_p0 = por %p49_p13, %p48_p12  ;;  %s36_s25 = ssub.s32 %s691_s16, %s953_s11 }
  0x2f   : > { %s190_s26 = sand.u32 1, %s683_s14   ;;  %p39_p7 = scmp.eq.s32.totalorder %s36_s25, 0 }
  0x30   : > { %s427_s27 = sshll.u32 %s190_s26, 4  ;;  %s440_s28 = sshll.u32 %s691_s16, 8 }
  0x31   : > { %s836_s29 = scalar_select %p39_p7, %s683_s14, %s41_s18  }
  0x32   : > { %s202_s7 = scalar_lea.hbm %s930_s0, %s440_s28  ;;  %s194_s8 = scalar_lea.vmem [#allocation2], %s427_s27 }
  0x33   : > { %s203_s9 = sshll.u32 %s194_s8, 4  ;;  %p843_p10 = pnand %p471_p3, %p50_p0  ;;  %s204_s9 = int_to_ptr.vmem [resolvable:$true] %s203_s9 }
  0x34   : > { %s191_s10 = scalar_lea.sflag [#allocation3], %s190_s26  ;;  %s596_s25 = scalar_lea.vmem %s204_s9, 256 }
  0x35   : > { %p585_p2 = pneg %p843_p10  ;;  %p597_p9 = scmp.ne.s32.totalorder %s204_s9, %s596_s25 }
  0x36   : > { %s701_s18 = smov [#allocation2]  }
  0x37   : > { %p599_p11 = pnand %p597_p9, %p585_p2  ;;  %s601_s4 = sshll.u32 %s701_s18, 4  ;;  %s602_s4 = int_to_ptr.vmem [resolvable:$false] %s601_s4 }
  0x38   : > { %s603_s28 = scalar_lea.vmem %s602_s4, 512  ;;  %p604_p13 = scmp.lt.s32.totalorder %s204_s9, %s602_s4 }
  0x39   : > { %p600_p12 = pneg %p599_p11  ;;  %p605_p7 = scmp.lt.s32.totalorder %s603_s28, %s596_s25 }
  0x3b   : > { %p606_p6 = por %p605_p7, %p604_p13 }
  0x3d   : > { %p607_p3 = pnand %p606_p6, %p600_p12 }
  0x3f   : > { %610 = shalt.err (!%p607_p3)
}
  0x40   : > { %s943_s27 = smov 128   ;;  %215 = sbr.rel (%p781_p8) target bundleno = 211 (0xd3), region = 32 }
  0x41   : > { %464 = dma.hbm_to_vmem [thread:$0]  (!%p843_p10), %s202_s7, 256, %s204_s9, %s191_s10, %s943_s27, %s943_s27, %s700_s5  }
  0x42   : > { %s857_s26 = sand.u32 (!%p781_p8), 1, %s679_s13  }
  0x43   : > { %s431_s4 = sshll.u32 (!%p781_p8), %s857_s26, 4  ;;  %s218_s30 = scalar_lea.sflag (!%p781_p8), [#allocation3], %s857_s26 }
  0x44   : > { %s221_s6 = scalar_lea.vmem (!%p781_p8), [#allocation2], %s431_s4 }
  0x45   : > { %662 = dma.done.wait (%p771_p4), %s218_s30, 256  }
  0x46   : > { %664 = vsyncadd (%p771_p4), %s218_s30, 4294967040 }
  0x47   : > { %666 = dma.done.wait (%p761_p1), [#allocation6], 512  }
  0x48   : > { %668 = vsyncadd (%p761_p1), [#allocation6], 4294966784  ;;  %v256_v0 = vld [vmem:[%s221_s6] sm:$0xff]  ;;  %s702_s24 = smov 127   ;;  %s703_s5 = smov 1   ;;  %v257_v1 = vld [vmem:[%s221_s6 + $0x8] sm:$0xff]  ;;  %v270_v2 = vlaneseq }
  0x49   : > { %266 = vrot.lane.b32.xlu1 %v256_v0, %s702_s24  ;;  %262 = vrot.lane.b32.xlu0 %v256_v0, %s703_s5  ;;  %v258_v5 = vld [vmem:[#allocation5] sm:$0xff]  ;;  %v260_v7 = vld [vmem:[#allocation7] sm:$0xff]  ;;  %v259_v11 = vld [vmem:[#allocation5 + $0x8] sm:$0xff]  ;;  %s251_s20 = scalar_lea.vmem [#allocation8], %s431_s4  ;;  %s441_s7 = sshll.u32 %s687_s15, 8 }
  0x4a   : > { %v271_v3 = vand.u32 127, %v270_v2  ;;  %v287_v8 = vmul.f32 %v258_v5, %v256_v0  ;;  %s311_s22 = sshll.u32 %s251_s20, 4  ;;  %v261_v14 = vld [vmem:[#allocation7 + $0x8] sm:$0xff]  ;;  %v288_v15 = vmul.f32 %v259_v11, %v257_v1  ;;  %s883_s21 = scalar_lea.hbm %s933_s3, %s441_s7  ;;  %s878_s22 = int_to_ptr.vmem [resolvable:$true] %s311_s22 }
  0x4b   : > { %s296_s10 = scalar_lea.sflag [#allocation4], %s857_s26  ;;  %s611_s25 = scalar_lea.vmem %s878_s22, 256 }
  0x4c   : > { %v276_v4 = vand.u32 1, %v271_v3  ;;  %p612_p1 = scmp.ne.s32.totalorder %s878_s22, %s611_s25  ;;  %s704_s15 = smov [#allocation8]  }
  0x4d   : > { %268 = vrot.lane.b32.xlu1 %v257_v1, %s702_s24  ;;  %264 = vrot.lane.b32.xlu0 %v257_v1, %s703_s5  ;;  %s615_s18 = sshll.u32 %s704_s15, 4  ;;  %s616_s18 = int_to_ptr.vmem [resolvable:$false] %s615_s18 }
  0x4e   : > { %vm869_vm0 = vcmp.eq.s32.totalorder %v276_v4, 1  ;;  %p613_p4 = pnand %p612_p1, %p827_p5  ;;  %s617_s28 = scalar_lea.vmem %s616_s18, 512 }
  0x4f   : > { %p618_p8 = scmp.lt.s32.totalorder %s878_s22, %s616_s18  ;;  %p619_p0 = scmp.lt.s32.totalorder %s617_s28, %s611_s25 }
  0x50   : > { %p614_p6 = pneg %p613_p4 }
  0x51   : > { %p620_p10 = por %p619_p0, %p618_p8 }
  0x53   : > { %p621_p2 = pnand %p620_p10, %p614_p6 }
  0xbb   : > { %v267_v9 = vpop.permute.xlu1 %266  ;;  %v263_v10 = vpop.permute.xlu0 %262 }
  0xbc   : > { %v285_v12 = vsel %vm869_vm0, %v263_v10, %v267_v9 }
  0xbd   : > { %v289_v13 = vmul.f32 %v285_v12, %v260_v7 }
  0xbf   : > { %v291_v16 = vadd.f32 %v289_v13, %v287_v8  ;;  %v269_v17 = vpop.permute.xlu1 %268  ;;  %v265_v18 = vpop.permute.xlu0 %264 }
  0xc0   : > { %v286_v19 = vsel %vm869_vm0, %v265_v18, %v269_v17 }
  0xc1   : > { %293 = vst [vmem:[%s251_s20] sm:$0xff] %v291_v16  ;;  %v290_v20 = vmul.f32 %v286_v19, %v261_v14 }
  0xc3   : > { %v292_v21 = vadd.f32 %v290_v20, %v288_v15 }
  0xc5   : > { %294 = vst [vmem:[%s251_s20 + $0x8] sm:$0xff] %v292_v21 }
  0xc6   : > { %624 = shalt.err (!%p621_p2)
}
  0xc7   : > { %s625_s27 = scalar_lea.hbm %s883_s21, 256  ;;  %s629_s6 = scalar_lea.hbm %s933_s3, 1024 }
  0xc8   : > { %p626_p9 = scmp.ne.s32.totalorder %s883_s21, %s625_s27  ;;  %p630_p13 = scmp.lt.s32.totalorder %s883_s21, %s933_s3 }
  0xc9   : > { %p631_p7 = scmp.lt.s32.totalorder %s629_s6, %s625_s27 }
  0xca   : > { %p627_p11 = pnand %p626_p9, %p827_p5 }
  0xcb   : > { %p632_p3 = por %p631_p7, %p630_p13 }
  0xcc   : > { %p628_p12 = pneg %p627_p11 }
  0xce   : > { %p633_p1 = pnand %p632_p3, %p628_p12 }
  0xd0   : > { %636 = shalt.err (!%p633_p1)
}
  0xd1   : > { %s705_s20 = smov 128   ;;  %s706_s7 = smov 8  }
  0xd2   : > { %452 = dma.vmem_to_hbm [thread:$0]  (%p827_p5), %s878_s22, 256, %s883_s21, %s296_s10, %s705_s20, %s705_s20, %s706_s7  }
  0xd3 PF: > { %p474_p4 = scmp.ge.s32.totalorder %s695_s17, 2  ;;  %s326_s8 = sand.u32 1, %s675_s12  }
  0xd4   : > { %p946_p6 = scmp.ne.s32.totalorder %s938_s23, 0  ;;  %s327_s9 = scalar_lea.sflag [#allocation4], %s326_s8 }
  0xd6   : > { %p466_p8 = pnand %p474_p4, %p946_p6 }
  0xd8   : > { %p467_p0 = pneg %p466_p8 }
  0xda   : > { %670 = dma.done.wait (%p467_p0), %s327_s9, 256  }
  0xdb   : > { %672 = vsyncadd (%p467_p0), %s327_s9, 4294967040  ;;  %s20_s17 = sadd.s32 1, %s695_s17   ;;  %s947_s12 = smov %s679_s13 }
  0xdc   : > { %p17_p10 = scmp.ge.s32.totalorder %s20_s17, 6   ;;  %s948_s13 = smov %s683_s14 }
  0xdd   : > { %s949_s14 = smov %s836_s29  ;;  %s950_s15 = smov %s691_s16 }
  0xde   : > { %s951_s16 = smov %s953_s11  ;;  %19 = sbr.rel (!%p17_p10) target bundleno = 7 (0x7), region = 87 }
  0xe3   :  { %332 = vsyncpa [#allocation3], 1 }
  0xe4   :  { %334 = vsyncpa [#allocation3 + $0x1], 1 }
  0xe5   :  { %335 = vsyncpa [#allocation6], 1 }
  0xe6   :  { %336 = vsyncpa [#allocation4], 1 }
  0xe7   :  { %338 = vsyncpa [#allocation4 + $0x1], 1 }

</bundles_post_ra>
